<compile_context>
chip_gen: v6e
topology: v6e:2x2x1
jax: 0.10.0
libtpu: 0.0.40
codegen_flags: <defaults>
</compile_context>

<pallas_src>
import functools

import jax
import jax.numpy as jnp
from jax.experimental import pallas as pl
from jax.experimental.pallas import tpu as pltpu

# ---- module hyper-params: GNN('gcn', hidden_dim=32, depth=2,
#                               num_node_features=8, 'mean', batch_norm=True)
HIDDEN = 32
DEPTH = 2
NUM_FEATS = 8
BN_EPS = 1e-5

_VMEM_LIMIT = 32 * 1024 * 1024   # safe on v5e/v6e (128 MiB) and v7x (64 MiB)


def _round_up(n, m):
    return ((n + m - 1) // m) * m


def _tiles_for(n):
    """Padded N and (row_tile TM, contraction_tile TK) for the Â tiles.

    Tiles are bf16 and double-buffered by the BlockSpec pipeline; the caps
    (TM=512, TK=1024) keep each Â buffer at ~1 MiB, well inside the scoped
    VMEM defaults on every TPU generation (incl. v7x's 64 MiB total).
    """
    npad = _round_up(n, 1024) if n >= 4096 else _round_up(n, 128)
    tm = 128
    while tm * 2 <= min(npad, 512) and npad % (tm * 2) == 0:
        tm *= 2
    tk = 128
    while tk * 2 <= min(npad, 1024) and npad % (tk * 2) == 0:
        tk *= 2
    return npad, tm, tk


# --------------------------------------------------------------------------
# embedding kernel: h0 = x @ We + be   (row-tiled over nodes)
# --------------------------------------------------------------------------
def _embed_kernel(x_ref, w_ref, b_ref, o_ref):
    h = jnp.dot(x_ref[...], w_ref[...],
                preferred_element_type=jnp.float32) + b_ref[...]
    o_ref[...] = h.astype(o_ref.dtype)


def _embed(x_pad, we, be, npad, tm):
    f = x_pad.shape[1]
    return pl.pallas_call(
        _embed_kernel,
        out_shape=jax.ShapeDtypeStruct((npad, HIDDEN), jnp.bfloat16),
        grid_spec=pltpu.PrefetchScalarGridSpec(
            num_scalar_prefetch=0,
            grid=(npad // tm,),
            in_specs=[pl.BlockSpec((tm, f), lambda i: (i, 0)),
                      pl.BlockSpec((f, HIDDEN), lambda i: (0, 0)),
                      pl.BlockSpec((1, HIDDEN), lambda i: (0, 0))],
            out_specs=pl.BlockSpec((tm, HIDDEN), lambda i: (i, 0))),
        compiler_params=pltpu.CompilerParams(
            dimension_semantics=("parallel",),
            vmem_limit_bytes=_VMEM_LIMIT),
    )(x_pad, we, be)


# --------------------------------------------------------------------------
# one GCN layer:  y = relu?( (Â @ h) @ W' + b' )
#   grid = (rows of Â, contraction over nodes); f32 accumulator in VMEM,
#   init at k==0, weight-transform + bias + relu + store at k==last.
# --------------------------------------------------------------------------
def _gcn_layer_kernel(a_ref, h_ref, w_ref, b_ref, o_ref, acc_ref, *,
                      apply_relu):
    k = pl.program_id(1)

    @pl.when(k == 0)
    def _():
        acc_ref[...] = jnp.zeros_like(acc_ref)

    # bf16 x bf16 MXU matmul, f32 accumulation
    acc_ref[...] += jnp.dot(a_ref[...], h_ref[...],
                            preferred_element_type=jnp.float32)

    @pl.when(k == pl.num_programs(1) - 1)
    def _():
        y = jnp.dot(acc_ref[...], w_ref[...],
                    preferred_element_type=jnp.float32) + b_ref[...]
        if apply_relu:
            y = jnp.maximum(y, 0.0)
        o_ref[...] = y.astype(o_ref.dtype)


def _gcn_layer(a_pad, h, w, b, npad, tm, tk, last):
    out_dtype = jnp.float32 if last else jnp.bfloat16
    grid = (npad // tm, npad // tk)
    kernel = functools.partial(_gcn_layer_kernel, apply_relu=not last)

    flops = 2 * npad * npad * HIDDEN + 2 * npad * HIDDEN * HIDDEN
    bytes_accessed = (npad * npad * 2                        # Â (bf16)
                      + grid[0] * npad * HIDDEN * 2          # h re-read / row tile
                      + npad * HIDDEN * jnp.dtype(out_dtype).itemsize)

    return pl.pallas_call(
        kernel,
        out_shape=jax.ShapeDtypeStruct((npad, HIDDEN), out_dtype),
        grid_spec=pltpu.PrefetchScalarGridSpec(
            num_scalar_prefetch=0,
            grid=grid,
            in_specs=[pl.BlockSpec((tm, tk), lambda i, k: (i, k)),       # Â tile
                      pl.BlockSpec((tk, HIDDEN), lambda i, k: (k, 0)),   # h rows
                      pl.BlockSpec((HIDDEN, HIDDEN), lambda i, k: (0, 0)),
                      pl.BlockSpec((1, HIDDEN), lambda i, k: (0, 0))],
            out_specs=pl.BlockSpec((tm, HIDDEN), lambda i, k: (i, 0)),
            scratch_shapes=[pltpu.VMEM((tm, HIDDEN), jnp.float32)]),
        compiler_params=pltpu.CompilerParams(
            dimension_semantics=("parallel", "arbitrary"),
            vmem_limit_bytes=_VMEM_LIMIT),
        cost_estimate=pl.CostEstimate(flops=flops, transcendentals=0,
                                      bytes_accessed=bytes_accessed),
    )(a_pad, h, w, b)


# --------------------------------------------------------------------------
# forward
# --------------------------------------------------------------------------
def gnn_forward(x, edge_index, batch, num_graphs, params):
    """x: (N, NUM_FEATS), edge_index: (2, E) int32, batch: (N,) int32."""
    n = x.shape[0]
    npad, tm, tk = _tiles_for(n)

    # --- PyG GCNConv normalization (no symmetrization; src -> dst flow) ---
    src, dst = edge_index[0], edge_index[1]
    adj = jnp.zeros((n, n), jnp.float32).at[dst, src].add(1.0)  # A[i,j]: edge j->i
    adj = adj + jnp.eye(n, dtype=jnp.float32)                   # self-loops
    deg = adj.sum(axis=1)
    dinv = jax.lax.rsqrt(jnp.maximum(deg, 1e-12))
    a_norm = dinv[:, None] * adj * dinv[None, :]                # D^-1/2 (A+I) D^-1/2

    # pad to tile multiples; cast Â to bf16 (halves HBM/VMEM traffic)
    a_pad = jnp.pad(a_norm, ((0, npad - n), (0, npad - n))).astype(jnp.bfloat16)
    x_pad = jnp.pad(x.astype(jnp.float32), ((0, npad - n), (0, 0)))

    we, be, wl, bl, gamma, beta, run_mean, run_var = params

    # --- fold eval-mode BatchNorm (running stats + eps) and bias into W', b'
    scale = gamma / jnp.sqrt(run_var + BN_EPS)                  # (DEPTH, H)
    w_fold = wl * scale[:, None, :]                             # (DEPTH, H, H)
    b_fold = (bl - run_mean) * scale + beta                     # (DEPTH, H)

    # --- node embedding + GCN layers (Pallas kernels) ---
    h = _embed(x_pad, we, be.reshape(1, -1), npad, tm)          # (npad, H) bf16
    for d in range(DEPTH):
        last = d == DEPTH - 1
        h = _gcn_layer(a_pad, h, w_fold[d], b_fold[d].reshape(1, -1),
                       npad, tm, tk, last)

    h = h[:n].astype(jnp.float32)

    # --- global mean pooling: tiny (G, N) x (N, H) matmul kept in XLA ---
    onehot = (batch[None, :] == jnp.arange(num_graphs)[:, None]).astype(jnp.float32)
    counts = jnp.maximum(onehot.sum(axis=1, keepdims=True), 1.0)
    return (onehot @ h) / counts                                # (G, H)


def init_params(key):
    k0, k1, k2, k3 = jax.random.split(key, 4)
    we = 0.1 * jax.random.normal(k0, (NUM_FEATS, HIDDEN), jnp.float32)
    be = 0.1 * jax.random.normal(k1, (HIDDEN,), jnp.float32)
    wl = 0.1 * jax.random.normal(k2, (DEPTH, HIDDEN, HIDDEN), jnp.float32)
    bl = 0.1 * jax.random.normal(k3, (DEPTH, HIDDEN), jnp.float32)
    gamma = jnp.ones((DEPTH, HIDDEN), jnp.float32)       # BN weight
    beta = jnp.zeros((DEPTH, HIDDEN), jnp.float32)       # BN bias
    run_mean = jnp.zeros((DEPTH, HIDDEN), jnp.float32)   # BN running_mean
    run_var = jnp.ones((DEPTH, HIDDEN), jnp.float32)     # BN running_var
    return we, be, wl, bl, gamma, beta, run_mean, run_var


if __name__ == "__main__":
    key = jax.random.PRNGKey(0)
    kx, kp = jax.random.split(key)

    num_graphs = 2
    nodes_per_graph = 160          # N = 320 -> padded 384 -> 3x3 layer grid
    num_nodes = num_graphs * nodes_per_graph

    # node features
    x = jax.random.normal(kx, (num_nodes, NUM_FEATS), jnp.float32)

    # edges: a directed ring inside each graph
    srcs, dsts = [], []
    for g in range(num_graphs):
        off = g * nodes_per_graph
        for i in range(nodes_per_graph):
            srcs.append(off + i)
            dsts.append(off + (i + 1) % nodes_per_graph)
    edge_index = jnp.array([srcs, dsts], dtype=jnp.int32)   # (2, E)

    # graph assignment per node
    batch = jnp.repeat(jnp.arange(num_graphs, dtype=jnp.int32), nodes_per_graph)

    params = init_params(kp)

    out = gnn_forward(x, edge_index, batch, num_graphs, params)
    out = jax.block_until_ready(out)
    assert out.shape == (num_graphs, HIDDEN)
    assert bool(jnp.all(jnp.isfinite(out)))
    print("KERNEL_OK")
</pallas_src>

<mosaic_0001>
module attributes {stable_mosaic.version = 11 : i64} {
  func.func @_embed_kernel(%arg0: i32, %arg1: memref<128x8xf32, #tpu.memory_space<vmem>>, %arg2: memref<8x32xf32, #tpu.memory_space<vmem>>, %arg3: memref<1x32xf32, #tpu.memory_space<vmem>>, %arg4: memref<128x32xbf16, #tpu.memory_space<vmem>>) attributes {dimension_semantics = [#tpu.dimension_semantics<parallel>], iteration_bounds = array<i64: 3>, scalar_prefetch = 0 : i64, scratch_operands = 0 : i64, tpu.core_type = #tpu.core_type<tc>, window_params = [{transform_indices = @transform_0, window_bounds = array<i64: 128, 8>}, {pipeline_mode = #tpu.pipeline_mode<synchronous>, transform_indices = @transform_1, window_bounds = array<i64: 8, 32>}, {pipeline_mode = #tpu.pipeline_mode<synchronous>, transform_indices = @transform_2, window_bounds = array<i64: 1, 32>}, {transform_indices = @transform_3, window_bounds = array<i64: 128, 32>}]} {
    %c0 = arith.constant 0 : index
    %c0_0 = arith.constant 0 : index
    %0 = vector.load %arg1[%c0, %c0_0] : memref<128x8xf32, #tpu.memory_space<vmem>>, vector<128x8xf32>
    %c0_1 = arith.constant 0 : index
    %c0_2 = arith.constant 0 : index
    %1 = vector.load %arg2[%c0_1, %c0_2] : memref<8x32xf32, #tpu.memory_space<vmem>>, vector<8x32xf32>
    %cst = arith.constant dense<0.000000e+00> : vector<128x32xf32>
    %2 = tpu.matmul %0, %1, %cst {dimension_numbers = #tpu.dot_dimension_numbers<[1], [0], [0], [1], [0, 0, 1, 1], [], []>} : vector<128x8xf32>, vector<8x32xf32>, vector<128x32xf32> -> vector<128x32xf32>
    %c0_3 = arith.constant 0 : index
    %c0_4 = arith.constant 0 : index
    %3 = vector.load %arg3[%c0_3, %c0_4] : memref<1x32xf32, #tpu.memory_space<vmem>>, vector<1x32xf32>
    %4 = vector.broadcast %3 : vector<1x32xf32> to vector<128x32xf32>
    %5 = arith.addf %2, %4 : vector<128x32xf32>
    %6 = arith.truncf %5 : vector<128x32xf32> to vector<128x32xbf16>
    %c0_5 = arith.constant 0 : index
    %c0_6 = arith.constant 0 : index
    %7 = vector.load %arg4[%c0_5, %c0_6] : memref<128x32xbf16, #tpu.memory_space<vmem>>, vector<128x32xbf16>
    tpu.vector_store %arg4[%c0_5, %c0_6], %6 {strides = array<i32>} : memref<128x32xbf16, #tpu.memory_space<vmem>>, vector<128x32xbf16>,
    return
  }
  func.func @transform_0(%arg0: i32) -> (i32, i32) {
    %c0_i32 = arith.constant 0 : i32
    %c0_i32_0 = arith.constant 0 : i32
    return %arg0, %c0_i32 : i32, i32
  }
  func.func @transform_1(%arg0: i32) -> (i32, i32) {
    %c0_i32 = arith.constant 0 : i32
    %c0_i32_0 = arith.constant 0 : i32
    %c0_i32_1 = arith.constant 0 : i32
    return %c0_i32, %c0_i32_0 : i32, i32
  }
  func.func @transform_2(%arg0: i32) -> (i32, i32) {
    %c0_i32 = arith.constant 0 : i32
    %c0_i32_0 = arith.constant 0 : i32
    %c0_i32_1 = arith.constant 0 : i32
    return %c0_i32, %c0_i32_0 : i32, i32
  }
  func.func @transform_3(%arg0: i32) -> (i32, i32) {
    %c0_i32 = arith.constant 0 : i32
    %c0_i32_0 = arith.constant 0 : i32
    return %arg0, %c0_i32 : i32, i32
  }
}

</mosaic_0001>

<bundles_post_ra>
// kernel: tpu_custom_call.1
= control target key start
LH: loop header
LB: loop body
LE: loop exit
PB: predicated region body
PF: predicated region fallthrough
CT: control target
= control target key end

     0   :  { %s670_s12 = smov 0   ;;  %s747_s0 = inlined_call_operand.vmem [shape: f32[384,8], index: 0, kind: input, shape index: {}]   ;;  %s748_s1 = inlined_call_operand.vmem [shape: f32[8,32], index: 1, kind: input, shape index: {}]   ;;  %s749_s2 = inlined_call_operand.vmem [shape: f32[1,32], index: 2, kind: input, shape index: {}]   ;;  %s750_s3 = inlined_call_operand.vmem [shape: bf16[384,32], index: 3, kind: output, shape index: {}]  }
   0x1 LB: > { %s529_s13 = sadd.s32 4294967295, %s648_s12   ;;  %p533_p0 = scmp.ge.s32.totalorder %s648_s12, 1  ;;  %s648_s12 = sphi %s670_s12, %s13_s12  }
   0x2   : > { %p138_p1 = scmp.lt.s32.totalorder %s648_s12, 4 }
   0x4   : > { %p139_p2 = pnand %p533_p0, %p138_p1 }
   0x5   : > { %s534_s16 = sshll.u32 (!%p139_p2), %s529_s13, 4 }
   0x6   : > { %142 = sbr.rel (%p139_p2) target bundleno = 229 (0xe5), region = 32  ;;  %p163_p3 = scmp.lt.s32.totalorder (!%p139_p2), %s534_s16, 47 }
   0xb   : > { %v190_v0 = vld [vmem:[%s748_s1] sm:$0xff]  ;;  %s752_s16 = smov (!%p163_p3, %s534_s16), 47  ;;  %vm198_vm0 = vcmask 64512   ;;  %vm456_vm1 = vcmask 257024  }
   0xc   : > { %606 = vmatprep.subr.mxu0 %v190_v0  ;;  %632 = vmatprep.subr.mxu1 %v190_v0  ;;  %s535_s17 = sshll.u32 %s752_s16, 3  ;;  %v538_v17 = vld [vmem:[%s749_s2] ss:$0 sm:$0xff]  ;;  %s537_s23 = sshll.u32 %s752_s16, 2 }
   0xd   : > { %607 = vmatpush3.msra.mxu0 %v190_v0  ;;  %633 = vmatpush3.msra.mxu1 %v190_v0  ;;  %s166_s20 = scalar_lea.vmem %s747_s0, %s535_s17  ;;  %s710_s26 = scalar_lea.vmem %s750_s3, %s537_s23 }
   0xe   : > { %v174_v1 = vld [vmem:[%s166_s20] sm:$0xff]  ;;  %v175_v3 = vld [vmem:[%s166_s20 + $0x8] sm:$0xff]  ;;  %v176_v5 = vld [vmem:[%s166_s20 + $0x10] sm:$0xff] }
   0xf   : > { %v182_v2 = vld [vmem:[%s166_s20 + $0x40] sm:$0xff]  ;;  %608 = vmatprep.mubr.msk.f32.mxu0 %vm198_vm0, %v174_v1  ;;  %v183_v4 = vld [vmem:[%s166_s20 + $0x48] sm:$0xff]  ;;  %v184_v6 = vld [vmem:[%s166_s20 + $0x50] sm:$0xff] }
  0x10   : > { %620 = vmatprep.mubr.msk.f32.mxu1 %vm198_vm0, %v182_v2  ;;  %609 = vmatmul.mubr.msk.f32.vlgmr.msra.gmra.mxu0 %vm198_vm0, %v175_v3  ;;  %v177_v7 = vld [vmem:[%s166_s20 + $0x18] sm:$0xff]  ;;  %v178_v9 = vld [vmem:[%s166_s20 + $0x20] sm:$0xff]  ;;  %v179_v11 = vld [vmem:[%s166_s20 + $0x28] sm:$0xff] }
  0x11   : > { %621 = vmatmul.mubr.msk.f32.vlgmr.msra.gmra.mxu1 %vm198_vm0, %v183_v4  ;;  %611 = vmatprep.mubr.msk.f32.mxu0 %vm198_vm0, %v176_v5  ;;  %v185_v8 = vld [vmem:[%s166_s20 + $0x58] sm:$0xff]  ;;  %v186_v10 = vld [vmem:[%s166_s20 + $0x60] sm:$0xff]  ;;  %v187_v12 = vld [vmem:[%s166_s20 + $0x68] sm:$0xff] }
  0x12   : > { %623 = vmatprep.mubr.msk.f32.mxu1 %vm198_vm0, %v184_v6  ;;  %v180_v13 = vld [vmem:[%s166_s20 + $0x30] sm:$0xff]  ;;  %v181_v15 = vld [vmem:[%s166_s20 + $0x38] sm:$0xff] }
  0x13   : > { %v188_v14 = vld [vmem:[%s166_s20 + $0x70] sm:$0xff]  ;;  %v189_v16 = vld [vmem:[%s166_s20 + $0x78] sm:$0xff] }
  0x14   : > { %612 = vmatmul.mubr.msk.f32.gmra.mxu0 %vm198_vm0, %v177_v7 }
  0x15   : > { %624 = vmatmul.mubr.msk.f32.gmra.mxu1 %vm198_vm0, %v185_v8  ;;  %614 = vmatprep.mubr.msk.f32.mxu0 %vm198_vm0, %v178_v9 }
  0x16   : > { %626 = vmatprep.mubr.msk.f32.mxu1 %vm198_vm0, %v186_v10 }
  0x18   : > { %615 = vmatmul.mubr.msk.f32.gmra.mxu0 %vm198_vm0, %v179_v11 }
  0x19   : > { %627 = vmatmul.mubr.msk.f32.gmra.mxu1 %vm198_vm0, %v187_v12  ;;  %617 = vmatprep.mubr.msk.f32.mxu0 %vm198_vm0, %v180_v13 }
  0x1a   : > { %629 = vmatprep.mubr.msk.f32.mxu1 %vm198_vm0, %v188_v14 }
  0x1c   : > { %618 = vmatmul.mubr.msk.f32.gmra.mxu0 %vm198_vm0, %v181_v15 }
  0x1d   : > { %630 = vmatmul.mubr.msk.f32.gmra.mxu1 %vm198_vm0, %v189_v16 }
  0xd0   : > { %v610_v18 = vpop.f32.mrf.mxu0 }
  0xd1   : > { %v622_v19 = vpop.f32.mrf.mxu1  ;;  %v319_v20 = vadd.f32 %v610_v18, %v538_v17 }
  0xd2   : > { %v359_v21 = vadd.f32 %v622_v19, %v538_v17  ;;  %v313_v22 = vpop.f32.mrf.mxu0 }
  0xd3   : > { %v353_v23 = vpop.f32.mrf.mxu1  ;;  %v574_v24 = vpack.c.bf16 %v319_v20, %v319_v20  ;;  %v314_v26 = vadd.f32 %v538_v17, %v313_v22 }
  0xd4   : > { %v582_v25 = vpack.c.bf16 %v359_v21, %v359_v21  ;;  %v354_v27 = vadd.f32 %v538_v17, %v353_v23  ;;  %v613_v28 = vpop.f32.mrf.mxu0 }
  0xd5   : > { %v625_v29 = vpop.f32.mrf.mxu1  ;;  %458 = vst.msk [vmem:[%s710_s26 + $0x4] sm:$0xf] %vm456_vm1, %v574_v24  ;;  %v573_v30 = vpack.c.bf16 %v314_v26, %v314_v26  ;;  %v329_v32 = vadd.f32 %v613_v28, %v538_v17 }
  0xd6   : > { %466 = vst.msk [vmem:[%s710_s26 + $0x24] sm:$0xf] %vm456_vm1, %v582_v25  ;;  %v581_v31 = vpack.c.bf16 %v354_v27, %v354_v27  ;;  %v369_v33 = vadd.f32 %v625_v29, %v538_v17  ;;  %v323_v34 = vpop.f32.mrf.mxu0 }
  0xd7   : > { %v363_v35 = vpop.f32.mrf.mxu1  ;;  %457 = vst.msk [vmem:[%s710_s26] sm:$0xf] %vm456_vm1, %v573_v30  ;;  %v576_v36 = vpack.c.bf16 %v329_v32, %v329_v32  ;;  %v324_v38 = vadd.f32 %v538_v17, %v323_v34 }
  0xd8   : > { %465 = vst.msk [vmem:[%s710_s26 + $0x20] sm:$0xf] %vm456_vm1, %v581_v31  ;;  %v584_v37 = vpack.c.bf16 %v369_v33, %v369_v33  ;;  %v364_v39 = vadd.f32 %v538_v17, %v363_v35  ;;  %v616_v40 = vpop.f32.mrf.mxu0 }
  0xd9   : > { %v628_v41 = vpop.f32.mrf.mxu1  ;;  %460 = vst.msk [vmem:[%s710_s26 + $0xc] sm:$0xf] %vm456_vm1, %v576_v36  ;;  %v575_v42 = vpack.c.bf16 %v324_v38, %v324_v38  ;;  %v339_v44 = vadd.f32 %v616_v40, %v538_v17 }
  0xda   : > { %468 = vst.msk [vmem:[%s710_s26 + $0x2c] sm:$0xf] %vm456_vm1, %v584_v37  ;;  %v583_v43 = vpack.c.bf16 %v364_v39, %v364_v39  ;;  %v379_v45 = vadd.f32 %v628_v41, %v538_v17  ;;  %v333_v46 = vpop.f32.mrf.mxu0 }
  0xdb   : > { %v373_v47 = vpop.f32.mrf.mxu1  ;;  %459 = vst.msk [vmem:[%s710_s26 + $0x8] sm:$0xf] %vm456_vm1, %v575_v42  ;;  %v578_v48 = vpack.c.bf16 %v339_v44, %v339_v44  ;;  %v334_v50 = vadd.f32 %v538_v17, %v333_v46 }
  0xdc   : > { %467 = vst.msk [vmem:[%s710_s26 + $0x28] sm:$0xf] %vm456_vm1, %v583_v43  ;;  %v586_v49 = vpack.c.bf16 %v379_v45, %v379_v45  ;;  %v374_v51 = vadd.f32 %v538_v17, %v373_v47  ;;  %v619_v52 = vpop.f32.mrf.mxu0 }
  0xdd   : > { %v631_v53 = vpop.f32.mrf.mxu1  ;;  %462 = vst.msk [vmem:[%s710_s26 + $0x14] sm:$0xf] %vm456_vm1, %v578_v48  ;;  %v577_v54 = vpack.c.bf16 %v334_v50, %v334_v50  ;;  %v349_v56 = vadd.f32 %v619_v52, %v538_v17 }
  0xde   : > { %470 = vst.msk [vmem:[%s710_s26 + $0x34] sm:$0xf] %vm456_vm1, %v586_v49  ;;  %v585_v55 = vpack.c.bf16 %v374_v51, %v374_v51  ;;  %v389_v57 = vadd.f32 %v631_v53, %v538_v17  ;;  %v343_v58 = vpop.f32.mrf.mxu0 }
  0xdf   : > { %v383_v59 = vpop.f32.mrf.mxu1  ;;  %461 = vst.msk [vmem:[%s710_s26 + $0x10] sm:$0xf] %vm456_vm1, %v577_v54  ;;  %v580_v60 = vpack.c.bf16 %v349_v56, %v349_v56  ;;  %v344_v62 = vadd.f32 %v538_v17, %v343_v58 }
  0xe0   : > { %469 = vst.msk [vmem:[%s710_s26 + $0x30] sm:$0xf] %vm456_vm1, %v585_v55  ;;  %v588_v61 = vpack.c.bf16 %v389_v57, %v389_v57  ;;  %v384_v63 = vadd.f32 %v538_v17, %v383_v59 }
  0xe1   : > { %464 = vst.msk [vmem:[%s710_s26 + $0x1c] sm:$0xf] %vm456_vm1, %v580_v60  ;;  %v579_v0 = vpack.c.bf16 %v344_v62, %v344_v62 }
  0xe2   : > { %472 = vst.msk [vmem:[%s710_s26 + $0x3c] sm:$0xf] %vm456_vm1, %v588_v61  ;;  %v587_v1 = vpack.c.bf16 %v384_v63, %v384_v63 }
  0xe3   : > { %463 = vst.msk [vmem:[%s710_s26 + $0x18] sm:$0xf] %vm456_vm1, %v579_v0 }
  0xe4   : > { %471 = vst.msk [vmem:[%s710_s26 + $0x38] sm:$0xf] %vm456_vm1, %v587_v1 }
  0xe5 PF: > { %s13_s12 = sadd.s32 1, %s648_s12  }
  0xe6   : > { %p10_p4 = scmp.ge.s32.totalorder %s13_s12, 5  }
  0xe8   :  { %12 = sbr.rel (!%p10_p4) target bundleno = 1 (0x1), region = 62 }

</bundles_post_ra>
